<compile_context>
chip_gen: v7x
topology: tpu7x:2x2x1
jax: 0.10.0
libtpu: 0.0.40
codegen_flags: <defaults>
</compile_context>

<pallas_src>
import functools

import jax
import jax.numpy as jnp
from jax.experimental import pallas as pl
from jax.experimental.pallas import tpu as pltpu


def _dls_kernel(pred_ref, target_ref, out_ref, *,
                on_minus_off, off_val, n_valid, ragged):
    """Label-smoothed NLL partial sum for one (TILE_N, C) batch block.

    pred_ref   : VMEM (TILE_N, C)  native dtype  -- logits, batch on sublanes
    target_ref : VMEM (TILE_N, 1)  int32         -- class index per sample
    out_ref    : VMEM (8, 128)     float32       -- block partial sum at [0, 0]
    """
    tile_n, c = pred_ref.shape

    # Load in native dtype, upcast once; all math in f32 (v5e has no bf16 VPU/EUP).
    x = pred_ref[...].astype(jnp.float32)                          # (TILE_N, C)

    # Numerically stable log-softmax over the class (lane) axis.
    m = jnp.max(x, axis=-1, keepdims=True)                         # (TILE_N, 1)
    z = x - m
    lse = jnp.log(jnp.sum(jnp.exp(z), axis=-1, keepdims=True))     # (TILE_N, 1)

    # logp[target] and sum_c(logp) without materializing logp or true_dist:
    #   logp = z - lse  =>  logp[tgt] = z[tgt] - lse ; sum_c logp = sum_c z - C*lse
    tgt = target_ref[...]                                          # (TILE_N, 1) i32
    col = jax.lax.broadcasted_iota(jnp.int32, (tile_n, c), 1)
    z_tgt = jnp.sum(jnp.where(col == tgt, z, 0.0), axis=-1, keepdims=True)
    logp_tgt = z_tgt - lse
    sum_logp = jnp.sum(z, axis=-1, keepdims=True) - jnp.float32(c) * lse

    # sum_c(-true_dist * logp) = -(on-off)*logp[tgt] - off*sum_c(logp)
    per_sample = (-jnp.float32(on_minus_off) * logp_tgt
                  - jnp.float32(off_val) * sum_logp)               # (TILE_N, 1)

    if ragged:
        # Zero rows past the true batch size (only traced in when the grid has
        # a ragged tail).  Select-mask, so garbage/NaN rows cannot leak through.
        row = jax.lax.broadcasted_iota(jnp.int32, (tile_n, 1), 0)
        gidx = row + pl.program_id(0) * tile_n
        per_sample = jnp.where(gidx < n_valid, per_sample, 0.0)

    # Per-block partial sum written once into a tiny lane-aligned (8,128) tile.
    total = jnp.sum(per_sample)
    idx = (jax.lax.broadcasted_iota(jnp.int32, (8, 128), 0)
           + jax.lax.broadcasted_iota(jnp.int32, (8, 128), 1))
    out_ref[...] = jnp.where(idx == 0, total, 0.0)


def _pick_tile_n(n, itemsize):
    """Largest batch tile whose double-buffered VMEM footprint fits all gens."""
    # Per batch row after lane padding to 128:
    #   logits  : 128 * itemsize bytes   (C <= 128 classes pad to one lane tile)
    #   targets : 128 * 4 bytes          (int32, lane-padded)
    per_row = 128 * itemsize + 128 * 4
    budget = 16 * 1024 * 1024                 # double-buffered working set target
    cap = budget // (2 * per_row)
    cap = max(256, (cap // 256) * 256)        # sublane-granule friendly (f32/bf16/i8)
    # Single full-array block when it fits (block == full dims, no divisibility
    # constraint, no ragged tail, no mask).
    return n if n <= cap else cap


def dynamic_label_smoothing_loss(pred, target, *, num_classes, epoch=0,
                                 min_smoothing=0.1, max_smoothing=0.2,
                                 tile_n=None):
    """JAX wrapper matching DynamicLabelSmoothing.forward."""
    # Epoch-dependent smoothing (host-side scalar, as in the PyTorch module).
    frac = min(float(epoch) / 30.0, 1.0)
    smoothing = max_smoothing - (max_smoothing - min_smoothing) * frac

    n, c = pred.shape
    assert c == num_classes
    off_val = smoothing / (num_classes - 1) if num_classes > 1 else 0.0
    on_minus_off = (1.0 - smoothing) - off_val

    if tile_n is None:
        tile_n = _pick_tile_n(n, jnp.dtype(pred.dtype).itemsize)
    n_blocks = pl.cdiv(n, tile_n)
    ragged = (n_blocks * tile_n != n)

    # Targets as an (N, 1) int32 column so each batch row carries its class id.
    target_col = target.astype(jnp.int32).reshape(n, 1)

    kernel = functools.partial(
        _dls_kernel,
        on_minus_off=on_minus_off,
        off_val=off_val,
        n_valid=n,
        ragged=ragged,
    )

    partials = pl.pallas_call(
        kernel,
        out_shape=jax.ShapeDtypeStruct((n_blocks * 8, 128), jnp.float32),
        grid_spec=pltpu.PrefetchScalarGridSpec(
            num_scalar_prefetch=0,
            grid=(n_blocks,),
            in_specs=[
                pl.BlockSpec((tile_n, c), lambda i: (i, 0)),   # logits, native (N, C)
                pl.BlockSpec((tile_n, 1), lambda i: (i, 0)),   # targets
            ],
            out_specs=pl.BlockSpec((8, 128), lambda i: (i, 0)),  # per-block partials
        ),
        compiler_params=pltpu.CompilerParams(
            dimension_semantics=("parallel",),
            vmem_limit_bytes=32 * 1024 * 1024,    # < v7x's 64 MiB physical VMEM
        ),
    )(pred, target_col)

    # Only element [8*i, 0] of each block is non-zero; plain sum is unbiased.
    return jnp.sum(partials) / jnp.float32(n)


def _reference_loss(pred, target, *, num_classes, epoch=0,
                    min_smoothing=0.1, max_smoothing=0.2):
    """Pure-JAX reference mirroring the PyTorch module."""
    frac = min(float(epoch) / 30.0, 1.0)
    smoothing = max_smoothing - (max_smoothing - min_smoothing) * frac
    logp = jax.nn.log_softmax(pred.astype(jnp.float32), axis=-1)
    true_dist = jnp.full_like(logp, smoothing / (num_classes - 1))
    true_dist = true_dist.at[jnp.arange(pred.shape[0]), target].set(1.0 - smoothing)
    return jnp.mean(jnp.sum(-true_dist * logp, axis=-1))


if __name__ == "__main__":
    key = jax.random.PRNGKey(0)
    k1, k2, k3, k4 = jax.random.split(key, 4)

    num_classes = 7          # e.g. 7 emotion classes (RAF-DB)
    epoch = 5                # module attribute `self.epoch`

    # --- Small test: single full-array block, f32 input ---
    batch = 8
    pred = jax.random.normal(k1, (batch, num_classes), dtype=jnp.float32)
    target = jax.random.randint(k2, (batch,), 0, num_classes, dtype=jnp.int32)

    loss = dynamic_label_smoothing_loss(pred, target,
                                        num_classes=num_classes, epoch=epoch)
    loss = jax.block_until_ready(loss)
    ref = _reference_loss(pred, target, num_classes=num_classes, epoch=epoch)
    assert jnp.allclose(loss, ref, rtol=1e-5, atol=1e-5), (loss, ref)

    # --- Multi-block test: grid=3 with ragged last block (300 = 2*128 + 44),
    #     bf16 logits pass through in native dtype (kernel upcasts). ---
    batch2 = 300
    pred2 = jax.random.normal(k3, (batch2, num_classes), dtype=jnp.float32)
    pred2_bf16 = pred2.astype(jnp.bfloat16)
    target2 = jax.random.randint(k4, (batch2,), 0, num_classes, dtype=jnp.int32)

    loss2 = dynamic_label_smoothing_loss(pred2_bf16, target2,
                                         num_classes=num_classes, epoch=epoch,
                                         tile_n=128)
    loss2 = jax.block_until_ready(loss2)
    ref2 = _reference_loss(pred2_bf16, target2, num_classes=num_classes, epoch=epoch)
    assert jnp.allclose(loss2, ref2, rtol=1e-4, atol=1e-4), (loss2, ref2)

    print("KERNEL_OK")
</pallas_src>

<mosaic_0001>
module attributes {stable_mosaic.version = 11 : i64} {
  func.func @_dls_kernel(%arg0: i32, %arg1: memref<8x7xf32, #tpu.memory_space<vmem>>, %arg2: memref<8x1xi32, #tpu.memory_space<vmem>>, %arg3: memref<8x128xf32, #tpu.memory_space<vmem>>) attributes {dimension_semantics = [#tpu.dimension_semantics<parallel>], iteration_bounds = array<i64: 1>, scalar_prefetch = 0 : i64, scratch_operands = 0 : i64, tpu.core_type = #tpu.core_type<tc>, window_params = [{transform_indices = @transform_0, window_bounds = array<i64: 8, 7>}, {transform_indices = @transform_1, window_bounds = array<i64: 8, 1>}, {transform_indices = @transform_2, window_bounds = array<i64: 8, 128>}]} {
    %c0 = arith.constant 0 : index
    %c0_0 = arith.constant 0 : index
    %0 = vector.load %arg1[%c0, %c0_0] : memref<8x7xf32, #tpu.memory_space<vmem>>, vector<8x7xf32>
    %cst = arith.constant dense<0xFF800000> : vector<8xf32>
    %1 = vector.multi_reduction <maximumf>, %0, %cst [1] : vector<8x7xf32> to vector<8xf32>
    %2 = vector.shape_cast %1 : vector<8xf32> to vector<8x1xf32>
    %3 = vector.broadcast %2 : vector<8x1xf32> to vector<8x7xf32>
    %4 = arith.subf %0, %3 : vector<8x7xf32>
    %5 = math.exp %4 : vector<8x7xf32>
    %cst_1 = arith.constant dense<0.000000e+00> : vector<8xf32>
    %6 = vector.multi_reduction <add>, %5, %cst_1 [1] : vector<8x7xf32> to vector<8xf32>
    %7 = vector.shape_cast %6 : vector<8xf32> to vector<8x1xf32>
    %8 = math.log %7 : vector<8x1xf32>
    %c0_2 = arith.constant 0 : index
    %c0_3 = arith.constant 0 : index
    %9 = vector.load %arg2[%c0_2, %c0_3] : memref<8x1xi32, #tpu.memory_space<vmem>>, vector<8x1xi32>
    %10 = tpu.iota {dimensions = array<i32: 1>} : vector<8x7xi32>
    %11 = vector.broadcast %9 : vector<8x1xi32> to vector<8x7xi32>
    %12 = arith.cmpi eq, %10, %11 : vector<8x7xi32>
    %cst_4 = arith.constant 0.000000e+00 : f32
    %13 = vector.broadcast %cst_4 : f32 to vector<8x7xf32>
    %14 = arith.select %12, %4, %13 : vector<8x7xi1>, vector<8x7xf32>
    %cst_5 = arith.constant dense<0.000000e+00> : vector<8xf32>
    %15 = vector.multi_reduction <add>, %14, %cst_5 [1] : vector<8x7xf32> to vector<8xf32>
    %16 = vector.shape_cast %15 : vector<8xf32> to vector<8x1xf32>
    %17 = arith.subf %16, %8 : vector<8x1xf32>
    %cst_6 = arith.constant dense<0.000000e+00> : vector<8xf32>
    %18 = vector.multi_reduction <add>, %4, %cst_6 [1] : vector<8x7xf32> to vector<8xf32>
    %19 = vector.shape_cast %18 : vector<8xf32> to vector<8x1xf32>
    %cst_7 = arith.constant 7.000000e+00 : f32
    %20 = vector.broadcast %cst_7 : f32 to vector<8x1xf32>
    %21 = arith.mulf %20, %8 : vector<8x1xf32>
    %22 = arith.subf %19, %21 : vector<8x1xf32>
    %cst_8 = arith.constant 0.000000e+00 : f32
    %cst_9 = arith.constant 0.786111116 : f32
    %23 = arith.subf %cst_8, %cst_9 : f32
    %24 = vector.broadcast %23 : f32 to vector<8x1xf32>
    %25 = arith.mulf %24, %17 : vector<8x1xf32>
    %cst_10 = arith.constant 0.0305555556 : f32
    %26 = vector.broadcast %cst_10 : f32 to vector<8x1xf32>
    %27 = arith.mulf %26, %22 : vector<8x1xf32>
    %28 = arith.subf %25, %27 : vector<8x1xf32>
    %29 = vector.shape_cast %28 : vector<8x1xf32> to vector<1x8x1xf32>
    %cst_11 = arith.constant dense<0.000000e+00> : vector<1xf32>
    %30 = vector.multi_reduction <add>, %29, %cst_11 [1, 2] : vector<1x8x1xf32> to vector<1xf32>
    %31 = vector.shape_cast %30 : vector<1xf32> to vector<1x1x1xf32>
    %32 = vector.extract %31[0, 0, 0] : f32 from vector<1x1x1xf32>
    %33 = tpu.iota {dimensions = array<i32: 0>} : vector<8x128xi32>
    %34 = tpu.iota {dimensions = array<i32: 1>} : vector<8x128xi32>
    %35 = arith.addi %33, %34 : vector<8x128xi32>
    %c0_i32 = arith.constant 0 : i32
    %36 = vector.broadcast %c0_i32 : i32 to vector<8x128xi32>
    %37 = arith.cmpi eq, %35, %36 : vector<8x128xi32>
    %cst_12 = arith.constant 0.000000e+00 : f32
    %38 = vector.broadcast %32 : f32 to vector<8x128xf32>
    %39 = vector.broadcast %cst_12 : f32 to vector<8x128xf32>
    %40 = arith.select %37, %38, %39 : vector<8x128xi1>, vector<8x128xf32>
    %c0_13 = arith.constant 0 : index
    %c0_14 = arith.constant 0 : index
    %41 = vector.load %arg3[%c0_13, %c0_14] : memref<8x128xf32, #tpu.memory_space<vmem>>, vector<8x128xf32>
    tpu.vector_store %arg3[%c0_13, %c0_14], %40 {strides = array<i32>} : memref<8x128xf32, #tpu.memory_space<vmem>>, vector<8x128xf32>,
    return
  }
  func.func @transform_0(%arg0: i32) -> (i32, i32) {
    %c0_i32 = arith.constant 0 : i32
    %c0_i32_0 = arith.constant 0 : i32
    return %arg0, %c0_i32 : i32, i32
  }
  func.func @transform_1(%arg0: i32) -> (i32, i32) {
    %c0_i32 = arith.constant 0 : i32
    %c0_i32_0 = arith.constant 0 : i32
    return %arg0, %c0_i32 : i32, i32
  }
  func.func @transform_2(%arg0: i32) -> (i32, i32) {
    %c0_i32 = arith.constant 0 : i32
    %c0_i32_0 = arith.constant 0 : i32
    return %arg0, %c0_i32 : i32, i32
  }
}

</mosaic_0001>

<bundles_post_ra>
// kernel: tpu_custom_call.1
= control target key start
LH: loop header
LB: loop body
LE: loop exit
PB: predicated region body
PF: predicated region fallthrough
CT: control target
= control target key end

     0   :  { %vm13_vm0 = vcmask 56320   ;;  %s149_s0 = inlined_call_operand.vmem [shape: f32[8,7], index: 0, kind: input, shape index: {}]   ;;  %s150_s1 = inlined_call_operand.vmem [shape: s32[8,1], index: 1, kind: input, shape index: {}]   ;;  %s151_s2 = inlined_call_operand.hbm [shape: f32[8,128], index: 2, kind: output, shape index: {}]  }
   0x1   :  { %v12_v0 = vld [vmem:[%s149_s0] sm:$0xff] }
   0x2   :  { %7 = vsyncpa [#allocation3], 0  ;;  %v14_v1 = vsel %vm13_vm0, %v12_v0, -inf  ;;  %v110_v2 = vmov 0   ;;  %v25_v3 = vld [vmem:[%s150_s1] sm:$0xff]  ;;  %v26_v7 = vlaneseq  ;;  %vm45_vm2 = vcmask 7168  }
   0x3   :  { %81 = vset.pattern.permute.xlu0 %v110_v2  ;;  %s111_s0 = smov [#allocation2]  }
   0x4   :  { %15 = vmax.xlane.f32.xlu0 %v14_v1  ;;  %v27_v8 = vand.u32 127, %v26_v7  ;;  %v57_v34 = vshrl.u32 %v26_v7, 7  ;;  %s69_s1 = sshll.u32 %s111_s0, 4  ;;  %s70_s1 = int_to_ptr.vmem [resolvable:$true] %s69_s1 }
   0x5   :  { %s86_s14 = scalar_lea.vmem %s70_s1, 128  ;;  %p91_p1 = scmp.lt.s32.totalorder %s70_s1, %s70_s1 }
   0x6   :  { %v58_v35 = vadd.s32 %v57_v34, %v27_v8  ;;  %p87_p0 = scmp.ne.s32.totalorder %s70_s1, %s86_s14  ;;  %p92_p2 = scmp.lt.s32.totalorder %s86_s14, %s86_s14 }
   0x8   :  { %vm59_vm3 = vcmp.eq.s32.totalorder %v58_v35, 0  ;;  %p93_p3 = por %p92_p2, %p91_p1 }
   0xa   :  { %p94_p4 = pnand %p93_p3, %p87_p0 }
  0x1a   :  { %29 = vperm.xlu0 %81, %v25_v3  }
  0x91   :  { %v16_v4 = vpop.xlane.xlu0 %15 }
  0x92   :  { %v17_v5 = vsub.f32 %v12_v0, %v16_v4 }
  0x94   :  { %v18_v6 = vmul.f32 1.442695, %v17_v5  ;;  %v37_v14 = vsel %vm13_vm0, %v17_v5, 0.0 }
  0x96   :  { %82 = vpow2.f32 %v18_v6 }
  0x99   :  { %v30_v9 = vpop.permute.xlu0 %29 }
  0x9a   :  { %vm31_vm1 = vcmp.eq.s32.totalorder %v27_v8, %v30_v9 }
  0x9b   :  { %v32_v12 = vsel %vm31_vm1, %v17_v5, 0.0 }
  0x9c   :  { %v33_v13 = vsel %vm13_vm0, %v32_v12, 0.0 }
  0xa0   :  { %v83_v10 = vpop.eup %82 }
  0xa1   :  { %v20_v11 = vsel %vm13_vm0, %v83_v10, 0.0 }
  0xa2   :  { %21 = vadd.xlane.f32.xlu1 %v20_v11 }
  0xa6   :  { %34 = vadd.xlane.f32.xlu1 %v33_v13 }
  0xaa   :  { %38 = vadd.xlane.f32.xlu1 %v37_v14 }
 0x12f   :  { %v22_v15 = vpop.xlane.xlu1 %21 }
 0x130   :  { %84 = vlog2.f32 %v22_v15 }
 0x133   :  { %v35_v16 = vpop.xlane.xlu1 %34 }
 0x137   :  { %v39_v21 = vpop.xlane.xlu1 %38 }
 0x13a   :  { %v85_v17 = vpop.eup %84 }
 0x13b   :  { %v24_v18 = vmul.f32 0.6931472, %v85_v17 }
 0x13d   :  { %v36_v19 = vsub.f32 %v35_v16, %v24_v18  ;;  %v40_v20 = vmul.f32 7.0, %v24_v18 }
 0x13f   :  { %v41_v22 = vsub.f32 %v39_v21, %v40_v20  ;;  %v42_v23 = vmul.f32 -0.7861111, %v36_v19 }
 0x141   :  { %v43_v24 = vmul.f32 0.030555556, %v41_v22 }
 0x143   :  { %v44_v25 = vsub.f32 %v42_v23, %v43_v24 }
 0x145   :  { %v46_v26 = vsel %vm45_vm2, %v44_v25, 0.0 }
 0x146   :  { %47 = vadd.xlane.f32.xlu1 %v46_v26 }
 0x1d3   :  { %v48_v27 = vpop.xlane.xlu1 %47 }
 0x1d4   :  { %v49_v28 = vrot.slane %v48_v27, 4 }
 0x1d6   :  { %v50_v29 = vadd.f32 %v49_v28, %v48_v27 }
 0x1d8   :  { %v51_v30 = vrot.slane %v50_v29, 2 }
 0x1da   :  { %v52_v31 = vadd.f32 %v51_v30, %v50_v29 }
 0x1dc   :  { %v53_v32 = vrot.slane %v52_v31, 1 }
 0x1de   :  { %v54_v33 = vadd.f32 %v53_v32, %v52_v31 }
 0x1e0   :  { %77 = vpush %v54_v33 }
 0x211   :  { %s78_s13 = spop %77 }
 0x212   :  { %v60_v36 = vstv %s78_s13 }
 0x213   :  { %v61_v37 = vsel %vm59_vm3, %v60_v36, 0.0 }
 0x214   :  { %62 = vst [vmem:[#allocation2] sm:$0xff] %v61_v37 }
 0x215   :  { %97 = shalt.err (!%p94_p4)
}
 0x216   :  { %s98_s17 = scalar_lea.hbm %s151_s2, 128 }
 0x217   :  { %p99_p5 = scmp.ne.s32.totalorder %s151_s2, %s98_s17  ;;  %p102_p6 = scmp.lt.u32.totalorder %s98_s17, %s151_s2 }
 0x219   :  { %p104_p7 = pnand %p102_p6, %p99_p5 }
 0x21b   :  { %107 = shalt.err (!%p104_p7)
}
 0x21c   :  { %72 = dma.vmem_to_hbm [thread:$0]  %s70_s1, 128, %s151_s2, [#allocation3]  }
 0x21d   :  { %108 = dma.done.wait [#allocation3], 128  }
 0x21e   :  { %109 = vsyncadd [#allocation3], 4294967168 }
 0x21f   :  { %76 = vsyncpa [#allocation3], 1 }

</bundles_post_ra>
